<compile_context>
chip_gen: v7x
topology: tpu7x:2x2x1
jax: 0.10.0
libtpu: 0.0.40
codegen_flags: <defaults>
</compile_context>

<pallas_src>
import jax
import jax.numpy as jnp
from jax.experimental import pallas as pl
from jax.experimental.pallas import tpu as pltpu


# ----------------------------- helpers ------------------------------------- #

def _round_up(x, m):
    return ((x + m - 1) // m) * m


def _pick_tile(n_pad):
    # n_pad is a multiple of 128; prefer the biggest tile that divides it.
    for cand in (512, 256, 128):
        if n_pad % cand == 0:
            return cand
    return 128  # unreachable


def _const_map(i, k):
    return (0, 0)


# ----------------------------- kernels ------------------------------------- #

def _gin_conv_kernel(a_ref, x_ref, w1_ref, b1_ref, w2_ref, b2_ref,
                     out_ref, acc_ref):
    """One row-tile of: relu( relu( ((A+I)@x) @ w1 + b1 ) @ w2 + b2 )."""
    k = pl.program_id(1)

    @pl.when(k == 0)
    def _():
        acc_ref[...] = jnp.zeros_like(acc_ref)

    # Neighbor aggregation: bf16 x bf16 on the MXU, f32 accumulation.
    acc_ref[...] += jnp.dot(a_ref[...], x_ref[...],
                            preferred_element_type=jnp.float32)

    @pl.when(k == pl.num_programs(1) - 1)
    def _():
        agg = acc_ref[...]
        h = jnp.dot(agg, w1_ref[...], preferred_element_type=jnp.float32) + b1_ref[...]
        h = jnp.maximum(h, 0.0)                       # ReLU inside nn1/nn2
        h = jnp.dot(h, w2_ref[...], preferred_element_type=jnp.float32) + b2_ref[...]
        h = jnp.maximum(h, 0.0)                       # F.relu after the conv
        out_ref[...] = h.astype(out_ref.dtype)


def _gin_conv_fc_kernel(a_ref, x_ref, w1_ref, b1_ref, w2_ref, b2_ref,
                        wfc_ref, bfc_ref, out_ref, acc_ref):
    """Second conv fused with the fc head (dropout is identity at inference)."""
    k = pl.program_id(1)

    @pl.when(k == 0)
    def _():
        acc_ref[...] = jnp.zeros_like(acc_ref)

    acc_ref[...] += jnp.dot(a_ref[...], x_ref[...],
                            preferred_element_type=jnp.float32)

    @pl.when(k == pl.num_programs(1) - 1)
    def _():
        agg = acc_ref[...]
        h = jnp.dot(agg, w1_ref[...], preferred_element_type=jnp.float32) + b1_ref[...]
        h = jnp.maximum(h, 0.0)
        h = jnp.dot(h, w2_ref[...], preferred_element_type=jnp.float32) + b2_ref[...]
        h = jnp.maximum(h, 0.0)
        # F.dropout in inference mode is the identity.
        # TODO(synk): training-mode dropout (pltpu.prng_random_bits mask) not implemented.
        out = (jnp.dot(h, wfc_ref[...], preferred_element_type=jnp.float32)
               + bfc_ref[...])
        out_ref[...] = out.astype(out_ref.dtype)


# ----------------------------- wrappers ------------------------------------ #

def _conv_call(kernel, a_pad, x_pad, weights, out_cols, out_dtype, tm, tk):
    n_pad = a_pad.shape[0]
    in_feat = x_pad.shape[1]
    grid = (n_pad // tm, n_pad // tk)

    in_specs = [
        pl.BlockSpec((tm, tk), lambda i, k: (i, k)),        # A tile (bf16)
        pl.BlockSpec((tk, in_feat), lambda i, k: (k, 0)),   # activation tile (bf16)
    ] + [pl.BlockSpec(w.shape, _const_map) for w in weights]  # VMEM-resident weights

    return pl.pallas_call(
        kernel,
        out_shape=jax.ShapeDtypeStruct((n_pad, out_cols), out_dtype),
        grid_spec=pltpu.PrefetchScalarGridSpec(
            num_scalar_prefetch=0,
            grid=grid,
            in_specs=in_specs,
            out_specs=pl.BlockSpec((tm, out_cols), lambda i, k: (i, 0)),
            scratch_shapes=[pltpu.VMEM((tm, in_feat), jnp.float32)],
        ),
        compiler_params=pltpu.CompilerParams(
            dimension_semantics=("parallel", "arbitrary"),
            vmem_limit_bytes=32 * 1024 * 1024,
        ),
    )(a_pad, x_pad, *weights)


def gin_forward(x, edge_index, params):
    """x: (N, num_features) f32; edge_index: (2, E) int32."""
    n, f = x.shape
    (w11, b11, w12, b12, w21, b21, w22, b22, wfc, bfc) = params
    hidden = w11.shape[1]
    n_classes = wfc.shape[1]

    # Dense adjacency with multiplicity; (1+eps)*I fused into the scatter (eps=0).
    src, dst = edge_index[0], edge_index[1]
    diag = jnp.arange(n, dtype=jnp.int32)
    a_hat = (jnp.zeros((n, n), jnp.float32)
             .at[dst, src].add(1.0)
             .at[diag, diag].add(1.0))

    # Lane/sublane-friendly padding (all feature dims -> multiples of 128).
    n_pad = _round_up(n, 128)
    f_pad = _round_up(f, 128)
    h_pad = _round_up(hidden, 128)
    c_pad = _round_up(n_classes, 128)

    # A is the dominant HBM operand -> store it as bf16 (integer counts exact).
    a_pad = jnp.zeros((n_pad, n_pad), jnp.bfloat16).at[:n, :n].set(
        a_hat.astype(jnp.bfloat16))
    # Activations streamed in bf16 too (cast once here, not per grid step).
    x_pad = jnp.zeros((n_pad, f_pad), jnp.bfloat16).at[:n, :f].set(
        x.astype(jnp.bfloat16))

    def pad2(w, rows, cols):
        return jnp.zeros((rows, cols), jnp.float32).at[:w.shape[0], :w.shape[1]].set(w)

    w11p, b11p = pad2(w11, f_pad, h_pad), pad2(b11, 1, h_pad)
    w12p, b12p = pad2(w12, h_pad, h_pad), pad2(b12, 1, h_pad)
    w21p, b21p = pad2(w21, h_pad, h_pad), pad2(b21, 1, h_pad)
    w22p, b22p = pad2(w22, h_pad, h_pad), pad2(b22, 1, h_pad)
    wfcp, bfcp = pad2(wfc, h_pad, c_pad), pad2(bfc, 1, c_pad)

    # 128-granular tiles (MXU-aligned); <=512x512 bf16 A tiles fit v7x's 64 MiB
    # VMEM with double buffering and headroom.
    tm = _pick_tile(n_pad)
    tk = _pick_tile(n_pad)

    # conv1 emits bf16 directly: it is only consumed by conv2's bf16 MXU
    # aggregation, and the rounding is identical to casting at the consumer.
    h1 = _conv_call(_gin_conv_kernel, a_pad, x_pad,
                    (w11p, b11p, w12p, b12p), h_pad, jnp.bfloat16, tm, tk)
    out_pad = _conv_call(_gin_conv_fc_kernel, a_pad, h1,
                         (w21p, b21p, w22p, b22p, wfcp, bfcp),
                         c_pad, jnp.float32, tm, tk)
    return out_pad[:n, :n_classes]


# ----------------------------- reference ----------------------------------- #

def gin_reference(x, edge_index, params, aggregate_dtype=jnp.float32):
    """Pure-JAX reference. aggregate_dtype=bfloat16 matches the kernel's MXU path."""
    hi = jax.lax.Precision.HIGHEST
    n = x.shape[0]
    src, dst = edge_index[0], edge_index[1]
    diag = jnp.arange(n, dtype=jnp.int32)
    a_hat = (jnp.zeros((n, n), jnp.float32)
             .at[dst, src].add(1.0)
             .at[diag, diag].add(1.0))
    (w11, b11, w12, b12, w21, b21, w22, b22, wfc, bfc) = params

    def agg(a, v):
        return jnp.dot(a.astype(aggregate_dtype), v.astype(aggregate_dtype),
                       preferred_element_type=jnp.float32, precision=hi)

    def lin(v, w, b):
        return jnp.dot(v, w, precision=hi) + b

    h = agg(a_hat, x)
    h = jnp.maximum(lin(h, w11, b11), 0.0)
    h = jnp.maximum(lin(h, w12, b12), 0.0)
    h = agg(a_hat, h)
    h = jnp.maximum(lin(h, w21, b21), 0.0)
    h = jnp.maximum(lin(h, w22, b22), 0.0)
    return lin(h, wfc, bfc)


def make_params(key, num_features, hidden_size, num_classes=3):
    ks = jax.random.split(key, 10)

    def lin(kw, kb, fan_in, fan_out):
        bound = 1.0 / jnp.sqrt(fan_in)
        w = jax.random.uniform(kw, (fan_in, fan_out), jnp.float32, -bound, bound)
        b = jax.random.uniform(kb, (1, fan_out), jnp.float32, -bound, bound)
        return w, b

    w11, b11 = lin(ks[0], ks[1], num_features, hidden_size)
    w12, b12 = lin(ks[2], ks[3], hidden_size, hidden_size)
    w21, b21 = lin(ks[4], ks[5], hidden_size, hidden_size)
    w22, b22 = lin(ks[6], ks[7], hidden_size, hidden_size)
    wfc, bfc = lin(ks[8], ks[9], hidden_size, num_classes)
    return (w11, b11, w12, b12, w21, b21, w22, b22, wfc, bfc)


# ------------------------------- main --------------------------------------- #

if __name__ == "__main__":
    num_nodes = 16
    num_features = 8
    hidden_size = 32
    num_edges = 40

    key = jax.random.PRNGKey(0)
    k_x, k_src, k_dst, k_p = jax.random.split(key, 4)

    x = jax.random.normal(k_x, (num_nodes, num_features), jnp.float32)
    src = jax.random.randint(k_src, (num_edges,), 0, num_nodes, jnp.int32)
    dst = jax.random.randint(k_dst, (num_edges,), 0, num_nodes, jnp.int32)
    edge_index = jnp.stack([src, dst], axis=0)   # (2, E)

    params = make_params(k_p, num_features, hidden_size)

    out = jax.block_until_ready(gin_forward(x, edge_index, params))
    assert out.shape == (num_nodes, 3)

    # Tight check against a reference that uses the same bf16 aggregation path.
    ref_matched = gin_reference(x, edge_index, params, aggregate_dtype=jnp.bfloat16)
    assert jnp.allclose(out, ref_matched, atol=2e-3, rtol=2e-3), \
        "mismatch vs bf16-matched reference"

    # Loose sanity check against the full-f32 PyTorch-equivalent semantics.
    ref_f32 = gin_reference(x, edge_index, params, aggregate_dtype=jnp.float32)
    assert jnp.allclose(out, ref_f32, atol=1e-1, rtol=1e-1), \
        "mismatch vs f32 reference"

    print("KERNEL_OK")
</pallas_src>

<mosaic_0001>
module attributes {stable_mosaic.version = 11 : i64} {
  func.func @_gin_conv_kernel(%arg0: i32, %arg1: i32, %arg2: memref<128x128xbf16, #tpu.memory_space<vmem>>, %arg3: memref<128x128xbf16, #tpu.memory_space<vmem>>, %arg4: memref<128x128xf32, #tpu.memory_space<vmem>>, %arg5: memref<1x128xf32, #tpu.memory_space<vmem>>, %arg6: memref<128x128xf32, #tpu.memory_space<vmem>>, %arg7: memref<1x128xf32, #tpu.memory_space<vmem>>, %arg8: memref<128x128xbf16, #tpu.memory_space<vmem>>, %arg9: memref<128x128xf32, #tpu.memory_space<vmem>>) attributes {dimension_semantics = [#tpu.dimension_semantics<parallel>, #tpu.dimension_semantics<arbitrary>], iteration_bounds = array<i64: 1, 1>, scalar_prefetch = 0 : i64, scratch_operands = 1 : i64, tpu.core_type = #tpu.core_type<tc>, window_params = [{transform_indices = @transform_0, window_bounds = array<i64: 128, 128>}, {transform_indices = @transform_1, window_bounds = array<i64: 128, 128>}, {pipeline_mode = #tpu.pipeline_mode<synchronous>, transform_indices = @transform_2, window_bounds = array<i64: 128, 128>}, {pipeline_mode = #tpu.pipeline_mode<synchronous>, transform_indices = @transform_3, window_bounds = array<i64: 1, 128>}, {pipeline_mode = #tpu.pipeline_mode<synchronous>, transform_indices = @transform_4, window_bounds = array<i64: 128, 128>}, {pipeline_mode = #tpu.pipeline_mode<synchronous>, transform_indices = @transform_5, window_bounds = array<i64: 1, 128>}, {transform_indices = @transform_6, window_bounds = array<i64: 128, 128>}]} {
    %c0_i32 = arith.constant 0 : i32
    %0 = arith.cmpi eq, %arg1, %c0_i32 : i32
    %1 = arith.extui %0 : i1 to i32
    %c0_i32_0 = arith.constant 0 : i32
    %2 = arith.cmpi ne, %1, %c0_i32_0 : i32
    scf.if %2 {
      %cst_10 = arith.constant 0.000000e+00 : f32
      %12 = vector.broadcast %cst_10 : f32 to vector<128x128xf32>
      %c0_11 = arith.constant 0 : index
      %c0_12 = arith.constant 0 : index
      %13 = vector.load %arg9[%c0_11, %c0_12] : memref<128x128xf32, #tpu.memory_space<vmem>>, vector<128x128xf32>
      tpu.vector_store %arg9[%c0_11, %c0_12], %12 {strides = array<i32>} : memref<128x128xf32, #tpu.memory_space<vmem>>, vector<128x128xf32>,
    } else {
    }
    %c0 = arith.constant 0 : index
    %c0_1 = arith.constant 0 : index
    %3 = vector.load %arg9[%c0, %c0_1] : memref<128x128xf32, #tpu.memory_space<vmem>>, vector<128x128xf32>
    %c0_2 = arith.constant 0 : index
    %c0_3 = arith.constant 0 : index
    %4 = vector.load %arg2[%c0_2, %c0_3] : memref<128x128xbf16, #tpu.memory_space<vmem>>, vector<128x128xbf16>
    %c0_4 = arith.constant 0 : index
    %c0_5 = arith.constant 0 : index
    %5 = vector.load %arg3[%c0_4, %c0_5] : memref<128x128xbf16, #tpu.memory_space<vmem>>, vector<128x128xbf16>
    %cst = arith.constant dense<0.000000e+00> : vector<128x128xf32>
    %6 = tpu.matmul %4, %5, %cst {dimension_numbers = #tpu.dot_dimension_numbers<[1], [0], [0], [1], [0, 0, 1, 1], [], []>} : vector<128x128xbf16>, vector<128x128xbf16>, vector<128x128xf32> -> vector<128x128xf32>
    %7 = arith.addf %3, %6 : vector<128x128xf32>
    %c0_6 = arith.constant 0 : index
    %c0_7 = arith.constant 0 : index
    %8 = vector.load %arg9[%c0_6, %c0_7] : memref<128x128xf32, #tpu.memory_space<vmem>>, vector<128x128xf32>
    tpu.vector_store %arg9[%c0_6, %c0_7], %7 {strides = array<i32>} : memref<128x128xf32, #tpu.memory_space<vmem>>, vector<128x128xf32>,
    %c0_i32_8 = arith.constant 0 : i32
    %9 = arith.cmpi eq, %arg1, %c0_i32_8 : i32
    %10 = arith.extui %9 : i1 to i32
    %c0_i32_9 = arith.constant 0 : i32
    %11 = arith.cmpi ne, %10, %c0_i32_9 : i32
    scf.if %11 {
      %c0_10 = arith.constant 0 : index
      %c0_11 = arith.constant 0 : index
      %12 = vector.load %arg9[%c0_10, %c0_11] : memref<128x128xf32, #tpu.memory_space<vmem>>, vector<128x128xf32>
      %c0_12 = arith.constant 0 : index
      %c0_13 = arith.constant 0 : index
      %13 = vector.load %arg4[%c0_12, %c0_13] : memref<128x128xf32, #tpu.memory_space<vmem>>, vector<128x128xf32>
      %cst_14 = arith.constant dense<0.000000e+00> : vector<128x128xf32>
      %14 = tpu.matmul %12, %13, %cst_14 {dimension_numbers = #tpu.dot_dimension_numbers<[1], [0], [0], [1], [0, 0, 1, 1], [], []>} : vector<128x128xf32>, vector<128x128xf32>, vector<128x128xf32> -> vector<128x128xf32>
      %c0_15 = arith.constant 0 : index
      %c0_16 = arith.constant 0 : index
      %15 = vector.load %arg5[%c0_15, %c0_16] : memref<1x128xf32, #tpu.memory_space<vmem>>, vector<1x128xf32>
      %16 = vector.broadcast %15 : vector<1x128xf32> to vector<128x128xf32>
      %17 = arith.addf %14, %16 : vector<128x128xf32>
      %cst_17 = arith.constant 0.000000e+00 : f32
      %18 = vector.broadcast %cst_17 : f32 to vector<128x128xf32>
      %19 = arith.maximumf %17, %18 : vector<128x128xf32>
      %c0_18 = arith.constant 0 : index
      %c0_19 = arith.constant 0 : index
      %20 = vector.load %arg6[%c0_18, %c0_19] : memref<128x128xf32, #tpu.memory_space<vmem>>, vector<128x128xf32>
      %cst_20 = arith.constant dense<0.000000e+00> : vector<128x128xf32>
      %21 = tpu.matmul %19, %20, %cst_20 {dimension_numbers = #tpu.dot_dimension_numbers<[1], [0], [0], [1], [0, 0, 1, 1], [], []>} : vector<128x128xf32>, vector<128x128xf32>, vector<128x128xf32> -> vector<128x128xf32>
      %c0_21 = arith.constant 0 : index
      %c0_22 = arith.constant 0 : index
      %22 = vector.load %arg7[%c0_21, %c0_22] : memref<1x128xf32, #tpu.memory_space<vmem>>, vector<1x128xf32>
      %23 = vector.broadcast %22 : vector<1x128xf32> to vector<128x128xf32>
      %24 = arith.addf %21, %23 : vector<128x128xf32>
      %cst_23 = arith.constant 0.000000e+00 : f32
      %25 = vector.broadcast %cst_23 : f32 to vector<128x128xf32>
      %26 = arith.maximumf %24, %25 : vector<128x128xf32>
      %27 = arith.truncf %26 : vector<128x128xf32> to vector<128x128xbf16>
      %c0_24 = arith.constant 0 : index
      %c0_25 = arith.constant 0 : index
      %28 = vector.load %arg8[%c0_24, %c0_25] : memref<128x128xbf16, #tpu.memory_space<vmem>>, vector<128x128xbf16>
      tpu.vector_store %arg8[%c0_24, %c0_25], %27 {strides = array<i32>} : memref<128x128xbf16, #tpu.memory_space<vmem>>, vector<128x128xbf16>,
    } else {
    }
    return
  }
  func.func @transform_0(%arg0: i32, %arg1: i32) -> (i32, i32) {
    %c0_i32 = arith.constant 0 : i32
    return %arg0, %arg1 : i32, i32
  }
  func.func @transform_1(%arg0: i32, %arg1: i32) -> (i32, i32) {
    %c0_i32 = arith.constant 0 : i32
    %c0_i32_0 = arith.constant 0 : i32
    return %arg1, %c0_i32 : i32, i32
  }
  func.func @transform_2(%arg0: i32, %arg1: i32) -> (i32, i32) {
    %c0_i32 = arith.constant 0 : i32
    %c0_i32_0 = arith.constant 0 : i32
    %c0_i32_1 = arith.constant 0 : i32
    return %c0_i32, %c0_i32_0 : i32, i32
  }
  func.func @transform_3(%arg0: i32, %arg1: i32) -> (i32, i32) {
    %c0_i32 = arith.constant 0 : i32
    %c0_i32_0 = arith.constant 0 : i32
    %c0_i32_1 = arith.constant 0 : i32
    return %c0_i32, %c0_i32_0 : i32, i32
  }
  func.func @transform_4(%arg0: i32, %arg1: i32) -> (i32, i32) {
    %c0_i32 = arith.constant 0 : i32
    %c0_i32_0 = arith.constant 0 : i32
    %c0_i32_1 = arith.constant 0 : i32
    return %c0_i32, %c0_i32_0 : i32, i32
  }
  func.func @transform_5(%arg0: i32, %arg1: i32) -> (i32, i32) {
    %c0_i32 = arith.constant 0 : i32
    %c0_i32_0 = arith.constant 0 : i32
    %c0_i32_1 = arith.constant 0 : i32
    return %c0_i32, %c0_i32_0 : i32, i32
  }
  func.func @transform_6(%arg0: i32, %arg1: i32) -> (i32, i32) {
    %c0_i32 = arith.constant 0 : i32
    %c0_i32_0 = arith.constant 0 : i32
    return %arg0, %c0_i32 : i32, i32
  }
}

</mosaic_0001>

<bundles_post_ra>
// kernel: tpu_custom_call.1
= control target key start
LH: loop header
LB: loop body
LE: loop exit
PB: predicated region body
PF: predicated region fallthrough
CT: control target
= control target key end

     0   :  { %11 = vsyncpa [#allocation4], 0  ;;  %s1529_s0 = inlined_call_operand.hbm [shape: bf16[128,128], index: 0, kind: input, shape index: {}]   ;;  %s1530_s1 = inlined_call_operand.hbm [shape: bf16[128,128], index: 1, kind: input, shape index: {}]   ;;  %s1531_s2 = inlined_call_operand.hbm [shape: f32[128,128], index: 2, kind: input, shape index: {}]   ;;  %s1532_s3 = inlined_call_operand.vmem [shape: f32[1,128], index: 3, kind: input, shape index: {}]   ;;  %s1533_s4 = inlined_call_operand.hbm [shape: f32[128,128], index: 4, kind: input, shape index: {}]   ;;  %s1534_s5 = inlined_call_operand.vmem [shape: f32[1,128], index: 5, kind: input, shape index: {}]   ;;  %s1535_s6 = inlined_call_operand.hbm [shape: bf16[128,128], index: 6, kind: output, shape index: {}]  }
   0x1   :  { %12 = vsyncpa [#allocation7], 0 }
   0x2   :  { %13 = vsyncpa [#allocation10], 0 }
   0x3   :  { %14 = vsyncpa [#allocation5], 0  ;;  %s1403_s21 = smov [#allocation6]   ;;  %s1404_s23 = smov [#allocation3]  }
   0x4   :  { %s32_s22 = sshll.u32 %s1403_s21, 4  ;;  %s20_s24 = sshll.u32 %s1404_s23, 4  ;;  %s33_s22 = int_to_ptr.vmem [resolvable:$true] %s32_s22  ;;  %s1447_s24 = int_to_ptr.vmem [resolvable:$true] %s20_s24 }
   0x5   :  { %s1285_s27 = scalar_lea.hbm %s1530_s1, 1024 }
   0x6   :  { %p1286_p0 = scmp.ne.s32.totalorder %s1530_s1, %s1285_s27  ;;  %p1289_p1 = scmp.lt.u32.totalorder %s1285_s27, %s1530_s1 }
   0x8   :  { %p1291_p2 = pnand %p1289_p1, %p1286_p0 }
   0xa   :  { %1294 = shalt.err (!%p1291_p2)
}
   0xb   :  { %s1295_s8 = scalar_lea.vmem %s33_s22, 1024  ;;  %p1300_p4 = scmp.lt.s32.totalorder %s33_s22, %s33_s22 }
   0xc   :  { %p1296_p3 = scmp.ne.s32.totalorder %s33_s22, %s1295_s8  ;;  %p1301_p5 = scmp.lt.s32.totalorder %s1295_s8, %s1295_s8 }
   0xe   :  { %p1302_p6 = por %p1301_p5, %p1300_p4 }
  0x10   :  { %p1303_p7 = pnand %p1302_p6, %p1296_p3 }
  0x12   :  { %1306 = shalt.err (!%p1303_p7)
}
  0x13   :  { %s1405_s9 = smov 64   ;;  %s1406_s10 = smov 4  }
  0x14   :  { %38 = dma.hbm_to_vmem [thread:$0]  %s1530_s1, 1024, %s33_s22, [#allocation7], %s1405_s9, %s1405_s9, %s1406_s10  }
  0x15   :  { %s1307_s15 = scalar_lea.hbm %s1529_s0, 1024 }
  0x16   :  { %p1308_p8 = scmp.ne.s32.totalorder %s1529_s0, %s1307_s15  ;;  %p1311_p9 = scmp.lt.u32.totalorder %s1307_s15, %s1529_s0 }
  0x18   :  { %p1313_p10 = pnand %p1311_p9, %p1308_p8 }
  0x1a   :  { %1316 = shalt.err (!%p1313_p10)
}
  0x1b   :  { %s1317_s20 = scalar_lea.vmem %s1447_s24, 1024  ;;  %p1322_p12 = scmp.lt.s32.totalorder %s1447_s24, %s1447_s24 }
  0x1c   :  { %p1318_p11 = scmp.ne.s32.totalorder %s1447_s24, %s1317_s20  ;;  %p1323_p13 = scmp.lt.s32.totalorder %s1317_s20, %s1317_s20 }
  0x1e   :  { %p1324_p0 = por %p1323_p13, %p1322_p12 }
  0x20   :  { %p1325_p1 = pnand %p1324_p0, %p1318_p11 }
  0x22   :  { %1328 = shalt.err (!%p1325_p1)
}
  0x23   :  { %26 = dma.hbm_to_vmem [thread:$0]  %s1529_s0, 1024, %s1447_s24, [#allocation4], %s1405_s9, %s1405_s9, %s1406_s10  }
  0x24   :  { %s1407_s22 = smov [#allocation8]   ;;  %s1329_s27 = scalar_lea.hbm %s1531_s2, 2048 }
  0x25   :  { %s44_s23 = sshll.u32 %s1407_s22, 4  ;;  %p1330_p2 = scmp.ne.s32.totalorder %s1531_s2, %s1329_s27  ;;  %s45_s23 = int_to_ptr.vmem [resolvable:$true] %s44_s23 }
  0x26   :  { %p1333_p3 = scmp.lt.u32.totalorder %s1329_s27, %s1531_s2 }
  0x28   :  { %p1335_p4 = pnand %p1333_p3, %p1330_p2 }
  0x2a   :  { %1338 = shalt.err (!%p1335_p4)
}
  0x2b   :  { %s1339_s8 = scalar_lea.vmem %s45_s23, 2048  ;;  %p1344_p6 = scmp.lt.s32.totalorder %s45_s23, %s45_s23 }
  0x2c   :  { %p1340_p5 = scmp.ne.s32.totalorder %s45_s23, %s1339_s8  ;;  %p1345_p7 = scmp.lt.s32.totalorder %s1339_s8, %s1339_s8 }
  0x2e   :  { %p1346_p8 = por %p1345_p7, %p1344_p6 }
  0x30   :  { %p1347_p9 = pnand %p1346_p8, %p1340_p5 }
  0x32   :  { %1350 = shalt.err (!%p1347_p9)
}
  0x33   :  { %s1408_s0 = smov 128   ;;  %s1409_s24 = smov 8  }
  0x34   :  { %50 = dma.hbm_to_vmem [thread:$0]  %s1531_s2, 2048, %s45_s23, [#allocation7], %s1408_s0, %s1408_s0, %s1409_s24  }
  0x35   :  { %s1410_s13 = smov [#allocation9]   ;;  %s1351_s17 = scalar_lea.hbm %s1533_s4, 2048 }
  0x36   :  { %s58_s14 = sshll.u32 %s1410_s13, 4  ;;  %p1352_p10 = scmp.ne.s32.totalorder %s1533_s4, %s1351_s17  ;;  %s59_s14 = int_to_ptr.vmem [resolvable:$true] %s58_s14 }
  0x37   :  { %p1355_p11 = scmp.lt.u32.totalorder %s1351_s17, %s1533_s4 }
  0x39   :  { %p1357_p12 = pnand %p1355_p11, %p1352_p10 }
  0x3b   :  { %1360 = shalt.err (!%p1357_p12)
}
  0x3c   :  { %s1361_s21 = scalar_lea.vmem %s59_s14, 2048  ;;  %p1366_p0 = scmp.lt.s32.totalorder %s59_s14, %s59_s14 }
  0x3d   :  { %p1362_p13 = scmp.ne.s32.totalorder %s59_s14, %s1361_s21  ;;  %p1367_p1 = scmp.lt.s32.totalorder %s1361_s21, %s1361_s21 }
  0x3f   :  { %p1368_p2 = por %p1367_p1, %p1366_p0 }
  0x41   :  { %p1369_p3 = pnand %p1368_p2, %p1362_p13 }
  0x43   :  { %1372 = shalt.err (!%p1369_p3)
}
  0x44   :  { %64 = dma.hbm_to_vmem [thread:$0]  %s1533_s4, 2048, %s59_s14, [#allocation10], %s1408_s0, %s1408_s0, %s1409_s24  }
  0x45   :  { %1395 = dma.done.wait [#allocation4], 1024  }
  0x46   :  { %1396 = vsyncadd [#allocation4], 4294966272 }
  0x47   :  { %1397 = dma.done.wait [#allocation7], 3072  }
  0x48   :  { %1398 = vsyncadd [#allocation7], 4294964224 }
  0x49   :  { %1399 = dma.done.wait [#allocation10], 2048  }
  0x4a   :  { %1400 = vsyncadd [#allocation10], 4294965248  ;;  %v1269_v0 = vld [vmem:[#allocation6] sm:$0xff]   ;;  %v1270_v1 = vld [vmem:[#allocation6 + $0x8] sm:$0xff]  }
  0x4b   :  { %1036 = vmatprep.subr.bf16.mxu0 %v1269_v0  ;;  %v1271_v2 = vld [vmem:[#allocation6 + $0x10] sm:$0xff]   ;;  %v1272_v3 = vld [vmem:[#allocation6 + $0x18] sm:$0xff]   ;;  %v1277_v4 = vld [vmem:[#allocation3] sm:$0xff]  }
  0x4c   :  { %1037 = vmatpush3.bf16.msra.mxu0 %v1269_v0  ;;  %1052 = vmatprep.mubr.bf16.mxu0 %v1277_v4  ;;  %v1273_v5 = vld [vmem:[#allocation6 + $0x20] sm:$0xff]   ;;  %v1274_v6 = vld [vmem:[#allocation6 + $0x28] sm:$0xff]   ;;  %v394_v9 = vld [vmem:[#allocation8 + $0x10] sm:$0xff] }
  0x4d   :  { %1038 = vmatprep.subr.bf16.mxu0 %v1270_v1  ;;  %v392_v7 = vld [vmem:[#allocation8] sm:$0xff]  ;;  %v393_v8 = vld [vmem:[#allocation8 + $0x8] sm:$0xff]  ;;  %v395_v11 = vld [vmem:[#allocation8 + $0x18] sm:$0xff] }
  0x4e   :  { %v1180_v10 = vpack.c.bf16 %v393_v8, %v392_v7  ;;  %v1184_v12 = vpack.c.bf16 %v395_v11, %v394_v9  ;;  %v396_v13 = vld [vmem:[#allocation8 + $0x20] sm:$0xff]  ;;  %v397_v14 = vld [vmem:[#allocation8 + $0x28] sm:$0xff]  ;;  %v1275_v15 = vld [vmem:[#allocation6 + $0x30] sm:$0xff]  }
  0x4f   :  { %v1188_v16 = vpack.c.bf16 %v397_v14, %v396_v13  ;;  %v398_v17 = vld [vmem:[#allocation8 + $0x30] sm:$0xff]  ;;  %v399_v18 = vld [vmem:[#allocation8 + $0x38] sm:$0xff]  ;;  %v400_v21 = vld [vmem:[#allocation8 + $0x40] sm:$0xff] }
  0x50   :  { %1039 = vmatpush3.bf16.msra.mxu0 %v1270_v1  ;;  %1181 = vmatprep.subr.bf16.mxu1 %v1180_v10  ;;  %v1276_v19 = vld [vmem:[#allocation6 + $0x38] sm:$0xff]   ;;  %v1192_v20 = vpack.c.bf16 %v399_v18, %v398_v17  ;;  %v401_v22 = vld [vmem:[#allocation8 + $0x48] sm:$0xff]  ;;  %v402_v25 = vld [vmem:[#allocation8 + $0x50] sm:$0xff] }
  0x51   :  { %1040 = vmatprep.subr.bf16.mxu0 %v1271_v2  ;;  %1183 = vmatpush3.bf16.msra.mxu1 %v1180_v10  ;;  %v1196_v23 = vpack.c.bf16 %v401_v22, %v400_v21  ;;  %v1278_v24 = vld [vmem:[#allocation3 + $0x8] sm:$0xff]   ;;  %v403_v26 = vld [vmem:[#allocation8 + $0x58] sm:$0xff]  ;;  %v1279_v27 = vld [vmem:[#allocation3 + $0x10] sm:$0xff]  }
  0x52   :  { %1185 = vmatprep.subr.bf16.mxu1 %v1184_v12  ;;  %v1200_v28 = vpack.c.bf16 %v403_v26, %v402_v25  ;;  %v404_v29 = vld [vmem:[#allocation8 + $0x60] sm:$0xff]  ;;  %v405_v30 = vld [vmem:[#allocation8 + $0x68] sm:$0xff]  ;;  %v1280_v32 = vld [vmem:[#allocation3 + $0x18] sm:$0xff]  }
  0x53   :  { %v1204_v31 = vpack.c.bf16 %v405_v30, %v404_v29  ;;  %v1281_v33 = vld [vmem:[#allocation3 + $0x20] sm:$0xff]   ;;  %v1282_v34 = vld [vmem:[#allocation3 + $0x28] sm:$0xff]   ;;  %v1283_v35 = vld [vmem:[#allocation3 + $0x30] sm:$0xff]  }
  0x54   :  { %1041 = vmatpush3.bf16.msra.mxu0 %v1271_v2  ;;  %v1284_v36 = vld [vmem:[#allocation3 + $0x38] sm:$0xff]   ;;  %v406_v37 = vld [vmem:[#allocation8 + $0x70] sm:$0xff]  ;;  %v576_v40 = vld [vmem:[#allocation9] sm:$0xff] }
  0x55   :  { %1042 = vmatprep.subr.bf16.mxu0 %v1272_v3  ;;  %1187 = vmatpush3.bf16.msra.mxu1 %v1184_v12  ;;  %v407_v38 = vld [vmem:[#allocation8 + $0x78] sm:$0xff]  ;;  %v577_v41 = vld [vmem:[#allocation9 + $0x8] sm:$0xff]  ;;  %v578_v42 = vld [vmem:[#allocation9 + $0x10] sm:$0xff] }
  0x56   :  { %1189 = vmatprep.subr.bf16.mxu1 %v1188_v16  ;;  %v1208_v39 = vpack.c.bf16 %v407_v38, %v406_v37  ;;  %v1212_v43 = vpack.c.bf16 %v577_v41, %v576_v40  ;;  %v579_v44 = vld [vmem:[#allocation9 + $0x18] sm:$0xff]  ;;  %v580_v46 = vld [vmem:[#allocation9 + $0x20] sm:$0xff]  ;;  %v581_v47 = vld [vmem:[#allocation9 + $0x28] sm:$0xff] }
  0x57   :  { %v1216_v45 = vpack.c.bf16 %v579_v44, %v578_v42  ;;  %v1220_v48 = vpack.c.bf16 %v581_v47, %v580_v46  ;;  %v582_v49 = vld [vmem:[#allocation9 + $0x30] sm:$0xff]  ;;  %v583_v50 = vld [vmem:[#allocation9 + $0x38] sm:$0xff]  ;;  %v584_v52 = vld [vmem:[#allocation9 + $0x40] sm:$0xff] }
  0x58   :  { %1043 = vmatpush3.bf16.msra.mxu0 %v1272_v3  ;;  %v1224_v51 = vpack.c.bf16 %v583_v50, %v582_v49  ;;  %v585_v53 = vld [vmem:[#allocation9 + $0x48] sm:$0xff]  ;;  %v586_v55 = vld [vmem:[#allocation9 + $0x50] sm:$0xff]  ;;  %v587_v56 = vld [vmem:[#allocation9 + $0x58] sm:$0xff] }
  0x59   :  { %1044 = vmatprep.subr.bf16.mxu0 %v1273_v5  ;;  %1191 = vmatpush3.bf16.msra.mxu1 %v1188_v16  ;;  %v1228_v54 = vpack.c.bf16 %v585_v53, %v584_v52  ;;  %v1232_v57 = vpack.c.bf16 %v587_v56, %v586_v55  ;;  %v588_v58 = vld [vmem:[#allocation9 + $0x60] sm:$0xff]  ;;  %v589_v59 = vld [vmem:[#allocation9 + $0x68] sm:$0xff]  ;;  %v590_v13 = vld [vmem:[#allocation9 + $0x70] sm:$0xff] }
  0x5a   :  { %1193 = vmatprep.subr.bf16.mxu1 %v1192_v20  ;;  %v1236_v60 = vpack.c.bf16 %v589_v59, %v588_v58  ;;  %v591_v14 = vld [vmem:[#allocation9 + $0x78] sm:$0xff]  ;;  %v875_v16 = vld [vmem:[%s1532_s3] ss:$0 sm:$0xff] }
  0x5c   :  { %1045 = vmatpush3.bf16.msra.mxu0 %v1273_v5 }
  0x5d   :  { %1046 = vmatprep.subr.bf16.mxu0 %v1274_v6  ;;  %1195 = vmatpush3.bf16.msra.mxu1 %v1192_v20 }
  0x5e   :  { %1197 = vmatprep.subr.bf16.mxu1 %v1196_v23 }
  0x60   :  { %1047 = vmatpush3.bf16.msra.mxu0 %v1274_v6 }
  0x61   :  { %1048 = vmatprep.subr.bf16.mxu0 %v1275_v15  ;;  %1199 = vmatpush3.bf16.msra.mxu1 %v1196_v23 }
  0x62   :  { %1201 = vmatprep.subr.bf16.mxu1 %v1200_v28 }
  0x64   :  { %1049 = vmatpush3.bf16.msra.mxu0 %v1275_v15  ;;  %v1240_v15 = vpack.c.bf16 %v591_v14, %v590_v13 }
  0x65   :  { %1050 = vmatprep.subr.bf16.mxu0 %v1276_v19  ;;  %1203 = vmatpush3.bf16.msra.mxu1 %v1200_v28 }
  0x66   :  { %1205 = vmatprep.subr.bf16.mxu1 %v1204_v31 }
  0x68   :  { %1051 = vmatpush3.bf16.msra.mxu0 %v1276_v19 }
  0x69   :  { %1207 = vmatpush3.bf16.msra.mxu1 %v1204_v31  ;;  %1213 = vmatprep.subr.bf16.mxu0 %v1212_v43 }
  0x6a   :  { %1209 = vmatprep.subr.bf16.mxu1 %v1208_v39 }
  0x6b   :  { %1053 = vmatmul.mubr.bf16.vlgmr.msra.gmra.mrb[0].mxu0 %v1278_v24 }
  0x6c   :  { %1056 = vmatprep.mubr.bf16.mxu0 %v1279_v27  ;;  %1215 = vmatpush3.bf16.msra.mxu0 %v1212_v43 }
  0x6d   :  { %1211 = vmatpush3.bf16.msra.mxu1 %v1208_v39  ;;  %1217 = vmatprep.subr.bf16.mxu0 %v1216_v45 }
  0x6e   :  { %1244 = vmatprep.subr.bf16.mxu1 %v1212_v43 }
  0x70   :  { %1219 = vmatpush3.bf16.msra.mxu0 %v1216_v45 }
  0x71   :  { %1221 = vmatprep.subr.bf16.mxu0 %v1220_v48 }
  0x73   :  { %1057 = vmatmul.mubr.bf16.gmra.mrb[4].mxu0 %v1280_v32 }
  0x74   :  { %1060 = vmatprep.mubr.bf16.mxu0 %v1281_v33  ;;  %1223 = vmatpush3.bf16.msra.mxu0 %v1220_v48 }
  0x75   :  { %1225 = vmatprep.subr.bf16.mxu0 %v1224_v51 }
  0x78   :  { %1227 = vmatpush3.bf16.msra.mxu0 %v1224_v51 }
  0x79   :  { %1229 = vmatprep.subr.bf16.mxu0 %v1228_v54 }
  0x7b   :  { %1061 = vmatmul.mubr.bf16.gmra.mrb[8].mxu0 %v1282_v34 }
  0x7c   :  { %1064 = vmatprep.mubr.bf16.mxu0 %v1283_v35  ;;  %1231 = vmatpush3.bf16.msra.mxu0 %v1228_v54 }
  0x7d   :  { %1233 = vmatprep.subr.bf16.mxu0 %v1232_v57 }
  0x80   :  { %1235 = vmatpush3.bf16.msra.mxu0 %v1232_v57 }
  0x81   :  { %1237 = vmatprep.subr.bf16.mxu0 %v1236_v60 }
  0x83   :  { %1065 = vmatmul.mubr.bf16.gmra.mrb[12].mxu0 %v1284_v36 }
  0x84   :  { %1239 = vmatpush3.bf16.msra.mxu0 %v1236_v60 }
  0x85   :  { %1241 = vmatprep.subr.bf16.mxu0 %v1240_v15 }
  0x88   :  { %1243 = vmatpush3.bf16.msra.mxu0 %v1240_v15 }
 0x13e   :  { %v1054_v61 = vpop.f32.mrb[0].mxu0 }
 0x13f   :  { %v278_v62 = vpop.f32.mrb[1].mxu0 }
 0x140   :  { %v1055_v63 = vpop.f32.mrb[2].mxu0  ;;  %1100 = vmatprep.mubr.f32.mxu1 %v278_v62 }
 0x141   :  { %v281_v0 = vpop.f32.mrb[3].mxu0 }
 0x142   :  { %1101 = vmatmul.mubr.f32.vlgmr.msra.gmra.mrb[0].mxu1 %v281_v0 }
 0x143   :  { %1103 = vmatprep.mubr.f32.mxu1 %v1054_v61  ;;  %1252 = vmatpush3.bf16.msra.mxu1 %v1212_v43 }
 0x144   :  { %1245 = vmatprep.subr.bf16.mxu1 %v1216_v45 }
 0x146   :  { %v1058_v1 = vpop.f32.mrb[4].mxu0  ;;  %1104 = vmatmul.mubr.f32.gmra.mrb[2].mxu1 %v1055_v63 }
 0x147   :  { %v294_v2 = vpop.f32.mrb[5].mxu0  ;;  %1253 = vmatpush3.bf16.msra.mxu1 %v1216_v45 }
 0x148   :  { %v1059_v3 = vpop.f32.mrb[6].mxu0  ;;  %1106 = vmatprep.mubr.f32.mxu1 %v294_v2  ;;  %1246 = vmatprep.subr.bf16.mxu1 %v1220_v48 }
 0x149   :  { %v297_v4 = vpop.f32.mrb[7].mxu0 }
 0x14a   :  { %1107 = vmatmul.mubr.f32.gmra.mrb[4].mxu1 %v297_v4 }
 0x14b   :  { %1109 = vmatprep.mubr.f32.mxu1 %v1058_v1  ;;  %1254 = vmatpush3.bf16.msra.mxu1 %v1220_v48  ;;  %v876_v1 = vld [vmem:[%s1534_s5] ss:$0 sm:$0xff]  ;;  %s1411_s5 = smov [#allocation11]  }
 0x14c   :  { %1247 = vmatprep.subr.bf16.mxu1 %v1224_v51  ;;  %s845_s26 = sshll.u32 %s1411_s5, 4  ;;  %s846_s26 = int_to_ptr.vmem [resolvable:$true] %s845_s26 }
 0x14d   :  { %s1373_s27 = scalar_lea.vmem %s846_s26, 1024  ;;  %p1378_p5 = scmp.lt.s32.totalorder %s846_s26, %s846_s26 }
 0x14e   :  { %v1062_v5 = vpop.f32.mrb[8].mxu0  ;;  %1110 = vmatmul.mubr.f32.gmra.mrb[6].mxu1 %v1059_v3  ;;  %p1374_p4 = scmp.ne.s32.totalorder %s846_s26, %s1373_s27  ;;  %p1379_p6 = scmp.lt.s32.totalorder %s1373_s27, %s1373_s27 }
 0x14f   :  { %v310_v6 = vpop.f32.mrb[9].mxu0  ;;  %1255 = vmatpush3.bf16.msra.mxu1 %v1224_v51 }
 0x150   :  { %v1063_v7 = vpop.f32.mrb[10].mxu0  ;;  %1112 = vmatprep.mubr.f32.mxu1 %v310_v6  ;;  %1248 = vmatprep.subr.bf16.mxu1 %v1228_v54  ;;  %p1380_p7 = por %p1379_p6, %p1378_p5 }
 0x151   :  { %v313_v8 = vpop.f32.mrb[11].mxu0 }
 0x152   :  { %1113 = vmatmul.mubr.f32.gmra.mrb[8].mxu1 %v313_v8  ;;  %p1381_p8 = pnand %p1380_p7, %p1374_p4 }
 0x153   :  { %1115 = vmatprep.mubr.f32.mxu1 %v1062_v5  ;;  %1256 = vmatpush3.bf16.msra.mxu1 %v1228_v54 }
 0x154   :  { %1249 = vmatprep.subr.bf16.mxu1 %v1232_v57 }
 0x156   :  { %v1066_v9 = vpop.f32.mrb[12].mxu0  ;;  %1116 = vmatmul.mubr.f32.gmra.mrb[10].mxu1 %v1063_v7 }
 0x157   :  { %v326_v10 = vpop.f32.mrb[13].mxu0  ;;  %1257 = vmatpush3.bf16.msra.mxu1 %v1232_v57 }
 0x158   :  { %v1067_v11 = vpop.f32.mrb[14].mxu0  ;;  %1118 = vmatprep.mubr.f32.mxu1 %v326_v10  ;;  %1250 = vmatprep.subr.bf16.mxu1 %v1236_v60 }
 0x159   :  { %v329_v12 = vpop.f32.mrb[15].mxu0 }
 0x15a   :  { %1119 = vmatmul.mubr.f32.gmra.mrb[12].mxu1 %v329_v12 }
 0x15b   :  { %1121 = vmatprep.mubr.f32.mxu1 %v1066_v9  ;;  %1258 = vmatpush3.bf16.msra.mxu1 %v1236_v60 }
 0x15c   :  { %1251 = vmatprep.subr.bf16.mxu1 %v1240_v15 }
 0x15e   :  { %1122 = vmatmul.mubr.f32.gmra.mrb[14].mxu1 %v1067_v11 }
 0x15f   :  { %1259 = vmatpush3.bf16.msra.mxu1 %v1240_v15 }
 0x215   :  { %v1102_v17 = vpop.f32.mrb[0].mxu1 }
 0x216   :  { %v487_v18 = vadd.f32 %v1102_v17, %v875_v16  ;;  %v481_v19 = vpop.f32.mrb[1].mxu1 }
 0x217   :  { %v482_v20 = vadd.f32 %v875_v16, %v481_v19 }
 0x218   :  { %v561_v23 = vmax.f32 %v487_v18, 0.0 }
 0x219   :  { %v560_v21 = vmax.f32 %v482_v20, 0.0  ;;  %v1105_v22 = vpop.f32.mrb[2].mxu1 }
 0x21a   :  { %v497_v24 = vadd.f32 %v1105_v22, %v875_v16  ;;  %v491_v25 = vpop.f32.mrb[3].mxu1 }
 0x21b   :  { %v492_v26 = vadd.f32 %v875_v16, %v491_v25  ;;  %1156 = vmatprep.mubr.f32.mxu0 %v560_v21 }
 0x21c   :  { %1157 = vmatmul.mubr.f32.vlgmr.msra.gmra.mrb[16].mxu0 %v561_v23  ;;  %v563_v29 = vmax.f32 %v497_v24, 0.0 }
 0x21d   :  { %v562_v27 = vmax.f32 %v492_v26, 0.0  ;;  %v1108_v28 = vpop.f32.mrb[4].mxu1 }
 0x21e   :  { %v507_v30 = vadd.f32 %v1108_v28, %v875_v16  ;;  %v501_v31 = vpop.f32.mrb[5].mxu1 }
 0x21f   :  { %v502_v32 = vadd.f32 %v875_v16, %v501_v31  ;;  %1159 = vmatprep.mubr.f32.mxu0 %v562_v27 }
 0x220   :  { %1160 = vmatmul.mubr.f32.gmra.mrb[18].mxu0 %v563_v29  ;;  %v565_v35 = vmax.f32 %v507_v30, 0.0 }
 0x221   :  { %v564_v33 = vmax.f32 %v502_v32, 0.0  ;;  %v1111_v34 = vpop.f32.mrb[6].mxu1 }
 0x222   :  { %v517_v36 = vadd.f32 %v1111_v34, %v875_v16  ;;  %v511_v37 = vpop.f32.mrb[7].mxu1 }
 0x223   :  { %v512_v38 = vadd.f32 %v875_v16, %v511_v37  ;;  %1162 = vmatprep.mubr.f32.mxu0 %v564_v33 }
 0x224   :  { %1163 = vmatmul.mubr.f32.gmra.mrb[20].mxu0 %v565_v35  ;;  %v567_v41 = vmax.f32 %v517_v36, 0.0 }
 0x225   :  { %v566_v39 = vmax.f32 %v512_v38, 0.0  ;;  %v1114_v40 = vpop.f32.mrb[8].mxu1 }
 0x226   :  { %v527_v42 = vadd.f32 %v1114_v40, %v875_v16  ;;  %v521_v43 = vpop.f32.mrb[9].mxu1 }
 0x227   :  { %v522_v44 = vadd.f32 %v875_v16, %v521_v43  ;;  %1165 = vmatprep.mubr.f32.mxu0 %v566_v39 }
 0x228   :  { %1166 = vmatmul.mubr.f32.gmra.mrb[22].mxu0 %v567_v41  ;;  %v569_v47 = vmax.f32 %v527_v42, 0.0 }
 0x229   :  { %v568_v45 = vmax.f32 %v522_v44, 0.0  ;;  %v1117_v46 = vpop.f32.mrb[10].mxu1 }
 0x22a   :  { %v537_v48 = vadd.f32 %v1117_v46, %v875_v16  ;;  %v531_v49 = vpop.f32.mrb[11].mxu1 }
 0x22b   :  { %v532_v50 = vadd.f32 %v875_v16, %v531_v49  ;;  %1168 = vmatprep.mubr.f32.mxu1 %v568_v45 }
 0x22c   :  { %1169 = vmatmul.mubr.f32.vlgmr.msra.gmra.mrb[16].mxu1 %v569_v47  ;;  %v571_v53 = vmax.f32 %v537_v48, 0.0 }
 0x22d   :  { %v570_v51 = vmax.f32 %v532_v50, 0.0  ;;  %v1120_v52 = vpop.f32.mrb[12].mxu1 }
 0x22e   :  { %v547_v54 = vadd.f32 %v1120_v52, %v875_v16  ;;  %v541_v55 = vpop.f32.mrb[13].mxu1 }
 0x22f   :  { %v542_v56 = vadd.f32 %v875_v16, %v541_v55  ;;  %1171 = vmatprep.mubr.f32.mxu1 %v570_v51 }
 0x230   :  { %1172 = vmatmul.mubr.f32.gmra.mrb[18].mxu1 %v571_v53  ;;  %v573_v59 = vmax.f32 %v547_v54, 0.0 }
 0x231   :  { %v572_v57 = vmax.f32 %v542_v56, 0.0  ;;  %v1123_v58 = vpop.f32.mrb[14].mxu1 }
 0x232   :  { %v557_v60 = vadd.f32 %v1123_v58, %v875_v16  ;;  %v551_v61 = vpop.f32.mrb[15].mxu1 }
 0x233   :  { %v552_v62 = vadd.f32 %v875_v16, %v551_v61  ;;  %1174 = vmatprep.mubr.f32.mxu1 %v572_v57 }
 0x234   :  { %1175 = vmatmul.mubr.f32.gmra.mrb[20].mxu1 %v573_v59  ;;  %v575_v0 = vmax.f32 %v557_v60, 0.0 }
 0x235   :  { %v574_v63 = vmax.f32 %v552_v62, 0.0 }
 0x237   :  { %1177 = vmatprep.mubr.f32.mxu1 %v574_v63 }
 0x238   :  { %1178 = vmatmul.mubr.f32.gmra.mrb[22].mxu1 %v575_v0 }
 0x2ef   :  { %v1158_v2 = vpop.f32.mrb[16].mxu0 }
 0x2f0   :  { %v671_v3 = vadd.f32 %v1158_v2, %v876_v1  ;;  %v665_v4 = vpop.f32.mrb[17].mxu0 }
 0x2f1   :  { %v666_v5 = vadd.f32 %v876_v1, %v665_v4 }
 0x2f2   :  { %v745_v6 = vmax.f32 %v671_v3, 0.0 }
 0x2f3   :  { %v744_v7 = vmax.f32 %v666_v5, 0.0  ;;  %v1161_v8 = vpop.f32.mrb[18].mxu0 }
 0x2f4   :  { %v681_v9 = vadd.f32 %v1161_v8, %v876_v1  ;;  %v675_v10 = vpop.f32.mrb[19].mxu0 }
 0x2f5   :  { %v912_v11 = vpack.c.bf16 %v745_v6, %v744_v7  ;;  %v676_v12 = vadd.f32 %v876_v1, %v675_v10 }
 0x2f6   :  { %v747_v13 = vmax.f32 %v681_v9, 0.0 }
 0x2f7   :  { %913 = vst [vmem:[#allocation11] sm:$0xff] %v912_v11   ;;  %v746_v14 = vmax.f32 %v676_v12, 0.0  ;;  %v1164_v15 = vpop.f32.mrb[20].mxu0 }
 0x2f8   :  { %v691_v16 = vadd.f32 %v1164_v15, %v876_v1  ;;  %v685_v17 = vpop.f32.mrb[21].mxu0 }
 0x2f9   :  { %v917_v18 = vpack.c.bf16 %v747_v13, %v746_v14  ;;  %v686_v19 = vadd.f32 %v876_v1, %v685_v17 }
 0x2fa   :  { %v749_v20 = vmax.f32 %v691_v16, 0.0 }
 0x2fb   :  { %949 = vst [vmem:[#allocation11 + $0x8] sm:$0xff] %v917_v18   ;;  %v748_v21 = vmax.f32 %v686_v19, 0.0  ;;  %v1167_v22 = vpop.f32.mrb[22].mxu0 }
 0x2fc   :  { %v701_v23 = vadd.f32 %v1167_v22, %v876_v1  ;;  %v695_v24 = vpop.f32.mrb[23].mxu0 }
 0x2fd   :  { %v922_v25 = vpack.c.bf16 %v749_v20, %v748_v21  ;;  %v696_v26 = vadd.f32 %v876_v1, %v695_v24 }
 0x2fe   :  { %v751_v27 = vmax.f32 %v701_v23, 0.0 }
 0x2ff   :  { %950 = vst [vmem:[#allocation11 + $0x10] sm:$0xff] %v922_v25   ;;  %v750_v28 = vmax.f32 %v696_v26, 0.0  ;;  %v1170_v29 = vpop.f32.mrb[16].mxu1 }
 0x300   :  { %v711_v30 = vadd.f32 %v1170_v29, %v876_v1  ;;  %v705_v31 = vpop.f32.mrb[17].mxu1 }
 0x301   :  { %v927_v32 = vpack.c.bf16 %v751_v27, %v750_v28  ;;  %v706_v33 = vadd.f32 %v876_v1, %v705_v31 }
 0x302   :  { %v753_v34 = vmax.f32 %v711_v30, 0.0 }
 0x303   :  { %951 = vst [vmem:[#allocation11 + $0x18] sm:$0xff] %v927_v32   ;;  %v752_v35 = vmax.f32 %v706_v33, 0.0  ;;  %v1173_v36 = vpop.f32.mrb[18].mxu1 }
 0x304   :  { %v721_v37 = vadd.f32 %v1173_v36, %v876_v1  ;;  %v715_v38 = vpop.f32.mrb[19].mxu1 }
 0x305   :  { %v932_v39 = vpack.c.bf16 %v753_v34, %v752_v35  ;;  %v716_v40 = vadd.f32 %v876_v1, %v715_v38 }
 0x306   :  { %v755_v41 = vmax.f32 %v721_v37, 0.0 }
 0x307   :  { %952 = vst [vmem:[#allocation11 + $0x20] sm:$0xff] %v932_v39   ;;  %v754_v42 = vmax.f32 %v716_v40, 0.0  ;;  %v1176_v43 = vpop.f32.mrb[20].mxu1 }
 0x308   :  { %v731_v44 = vadd.f32 %v1176_v43, %v876_v1  ;;  %v725_v45 = vpop.f32.mrb[21].mxu1 }
 0x309   :  { %v937_v46 = vpack.c.bf16 %v755_v41, %v754_v42  ;;  %v726_v47 = vadd.f32 %v876_v1, %v725_v45 }
 0x30a   :  { %v757_v48 = vmax.f32 %v731_v44, 0.0 }
 0x30b   :  { %953 = vst [vmem:[#allocation11 + $0x28] sm:$0xff] %v937_v46   ;;  %v756_v49 = vmax.f32 %v726_v47, 0.0  ;;  %v1179_v50 = vpop.f32.mrb[22].mxu1 }
 0x30c   :  { %v741_v51 = vadd.f32 %v1179_v50, %v876_v1  ;;  %v735_v52 = vpop.f32.mrb[23].mxu1 }
 0x30d   :  { %v942_v53 = vpack.c.bf16 %v757_v48, %v756_v49  ;;  %v736_v54 = vadd.f32 %v876_v1, %v735_v52 }
 0x30e   :  { %v759_v55 = vmax.f32 %v741_v51, 0.0 }
 0x30f   :  { %954 = vst [vmem:[#allocation11 + $0x30] sm:$0xff] %v942_v53   ;;  %v758_v56 = vmax.f32 %v736_v54, 0.0 }
 0x311   :  { %v947_v57 = vpack.c.bf16 %v759_v55, %v758_v56 }
 0x313   :  { %955 = vst [vmem:[#allocation11 + $0x38] sm:$0xff] %v947_v57  }
 0x314   :  { %1384 = shalt.err (!%p1381_p8)
}
 0x315   :  { %s1385_s30 = scalar_lea.hbm %s1535_s6, 1024 }
 0x316   :  { %p1386_p9 = scmp.ne.s32.totalorder %s1535_s6, %s1385_s30  ;;  %p1389_p10 = scmp.lt.u32.totalorder %s1385_s30, %s1535_s6 }
 0x318   :  { %p1391_p11 = pnand %p1389_p10, %p1386_p9 }
 0x31a   :  { %1394 = shalt.err (!%p1391_p11)
}
 0x31b   :  { %851 = dma.vmem_to_hbm [thread:$0]  %s846_s26, 1024, %s1535_s6, [#allocation5], %s1405_s9, %s1405_s9, %s1406_s10  }
 0x31c   :  { %1401 = dma.done.wait [#allocation5], 1024  }
 0x31d   :  { %1402 = vsyncadd [#allocation5], 4294966272 }
 0x31e   :  { %855 = vsyncpa [#allocation4], 1 }
 0x31f   :  { %856 = vsyncpa [#allocation7], 1 }
 0x320   :  { %857 = vsyncpa [#allocation10], 1 }
 0x321   :  { %858 = vsyncpa [#allocation5], 1 }

</bundles_post_ra>
